<compile_context>
chip_gen: v6e
topology: v6e:2x2x1
jax: 0.10.0
libtpu: 0.0.40
codegen_flags: <defaults>
</compile_context>

<pallas_src>
import functools

import numpy as np
import jax
import jax.numpy as jnp
from jax import lax
from jax.experimental import pallas as pl
from jax.experimental.pallas import tpu as pltpu


def _round_up(x, m):
    return ((x + m - 1) // m) * m


def _tempo_kernel(K, wl_ref, cl_ref, tp_ref, so_ref,
                  noise_ref, clean_ref, out_ref):
    """One batch item x one output-time tile of T lanes.

    wl_ref:  (B,)     original valid lengths            (SMEM, int32)
    cl_ref:  (B,)     stretched clean lengths           (SMEM, int32)
    tp_ref:  (B,)     tempo factors in [0.9, 1.1]       (SMEM, float32)
    so_ref:  (B, NT)  128-aligned source band offsets   (SMEM, int32)
    noise_ref: (1, C, T)   noise tile
    clean_ref: (1, C, L)   full clean signal of this item (resident across t)
    out_ref:   (2, 1, C, T) stacked (noise, clean) output tile
    """
    b = pl.program_id(0)
    t = pl.program_id(1)
    _, C, L = clean_ref.shape
    T = out_ref.shape[3]

    wl = wl_ref[b]          # original valid length
    cl = cl_ref[b]          # stretched clean length
    tempo = tp_ref[b]       # tempo factor
    src_off = so_ref[b, t]  # host-precomputed, lane-aligned band start
    if L % 128 == 0 and K % 128 == 0:
        src_off = pl.multiple_of(src_off, 128)

    # Global output column index of each lane in this tile: (1, T).
    col = lax.broadcasted_iota(jnp.int32, (1, T), 1) + t * T
    src = col.astype(jnp.float32) * tempo
    i0u = jnp.floor(src).astype(jnp.int32)
    frac = src - i0u.astype(jnp.float32)
    i0 = jnp.minimum(i0u, wl - 1)
    i1 = jnp.minimum(i0 + 1, wl - 1)
    # At the clamp boundary (i1 == i0) the two interp weights collapse to 1.
    w_hi = jnp.where(i1 == i0, 1.0, 1.0 - frac)           # (1, T) f32

    # Band-relative source rows; rows outside [0, K) simply match nothing and
    # the corresponding columns are zeroed by the clean_keep mask below.
    r0 = i0 - src_off
    r1 = i1 - src_off

    # (K, T) band weight matrix — only 2 compares + 2 selects at band shape.
    s_idx = lax.broadcasted_iota(jnp.int32, (K, T), 0)
    w = jnp.where(s_idx == r0, w_hi,
                  jnp.where(s_idx == r1, frac, 0.0))       # (K, T) f32

    # Slice the needed source band from the VMEM-resident clean block and
    # run the small (C, K) @ (K, T) matmul in f32 on the MXU.
    band = clean_ref[0, :, pl.ds(src_off, K)]              # (C, K) f32
    stretched = jnp.dot(band, w,
                        preferred_element_type=jnp.float32)  # (C, T)

    # Length reconciliation (same as the torch per-item loop):
    #   cl >= wl : clean truncated to wl, noise kept full (length L)
    #   cl <  wl : clean kept at cl,      noise truncated to cl
    # followed by zero-padding (F.pad equivalent) via lane masks.
    clean_keep = jnp.minimum(cl, wl)
    noise_keep = jnp.where(cl >= wl, L, cl)

    out_ref[1, 0] = jnp.where(col < clean_keep, stretched, 0.0)
    out_ref[0, 0] = jnp.where(col < noise_keep, noise_ref[0], 0.0)


def tempo_augment(wav, wav_length, tempos):
    """wav: (2, B, C, L) float32, wav_length: (B,) int, tempos: (B,) float.

    Returns (2, B, C, max_length) as in TempoAugment.forward.
    """
    _, B, C, L = wav.shape
    wav_length = np.asarray(wav_length, dtype=np.int32)
    tempos = np.asarray(tempos, dtype=np.float32)

    # Stretched lengths and the (data-dependent) output length are host-known,
    # since tempos are host-generated (np.random in the torch module).
    clean_len = np.round(
        wav_length.astype(np.float64) / tempos.astype(np.float64)
    ).astype(np.int32)
    max_length = max(1, int(min(int(clean_len.max()), L)))

    # Output padded to the lane tile; T = output-time tile width (matmul N).
    Lp = max(128, _round_up(max_length, 128))
    T = 256 if (Lp >= 256 and Lp % 256 == 0) else 128
    NT = Lp // T

    # Source band width: covers 1.1*T stretched samples plus float-rounding
    # margin plus 128 lanes of alignment slack; capped at the full signal.
    K = min(L, _round_up(int(np.ceil(1.1 * T)) + 8, 128) + 128)

    # Host-precomputed, 128-aligned source band offsets per (item, tile).
    tt = (np.arange(NT, dtype=np.float64) * T)[None, :] \
        * tempos.astype(np.float64)[:, None]
    raw = np.maximum(np.floor(tt).astype(np.int64) - 2, 0)
    aligned = (raw // 128) * 128
    aligned = np.minimum(aligned, max(0, L - K))
    src_off = aligned.astype(np.int32)                      # (B, NT)

    noise = wav[0]
    clean = wav[1]

    noise_spec = pl.BlockSpec((1, C, T), lambda b, t, *_: (b, 0, t))
    # Full per-item clean signal; block index is t-invariant, so the pipeline
    # fetches it once per item and keeps it resident across all time tiles.
    clean_spec = pl.BlockSpec((1, C, L), lambda b, t, *_: (b, 0, 0))
    out_spec = pl.BlockSpec((2, 1, C, T), lambda b, t, *_: (0, b, 0, t))

    # VMEM budget (sized for v7x's 64 MiB physical with headroom; v5e/v6e have
    # more physical VMEM but a low default scoped limit, so set it explicitly).
    f32 = 4
    est = (2 * C * L * f32                      # clean block (double-buffered)
           + 2 * C * T * f32                    # noise block
           + 2 * 2 * C * T * f32                # stacked output block
           + 4 * (K * T + C * K + C * T) * f32  # W band + slices + slack
           + (8 << 20))
    vmem_limit = int(min(56 << 20, max(24 << 20, est)))

    grid_spec = pltpu.PrefetchScalarGridSpec(
        num_scalar_prefetch=4,
        grid=(B, NT),
        in_specs=[noise_spec, clean_spec],
        out_specs=out_spec,
    )

    out = pl.pallas_call(
        functools.partial(_tempo_kernel, K),
        grid_spec=grid_spec,
        out_shape=jax.ShapeDtypeStruct((2, B, C, Lp), jnp.float32),
        compiler_params=pltpu.CompilerParams(
            dimension_semantics=("parallel", "parallel"),
            vmem_limit_bytes=vmem_limit),
    )(jnp.asarray(wav_length, dtype=jnp.int32),
      jnp.asarray(clean_len, dtype=jnp.int32),
      jnp.asarray(tempos, dtype=jnp.float32),
      jnp.asarray(src_off, dtype=jnp.int32),
      noise, clean)

    if Lp != max_length:
        out = out[..., :max_length]             # thin (<128-lane) trim only
    return out


def _reference(wav, wav_length, tempos):
    """Pure-numpy reference of the kernel math (f32 index math → exact i0/i1)."""
    _, B, C, L = wav.shape
    noise = np.asarray(wav[0], dtype=np.float32)
    clean = np.asarray(wav[1], dtype=np.float32)
    wav_length = np.asarray(wav_length, dtype=np.int32)
    tempos = np.asarray(tempos, dtype=np.float32)
    clean_len = np.round(
        wav_length.astype(np.float64) / tempos.astype(np.float64)
    ).astype(np.int32)

    noise2 = np.zeros((B, C, L), np.float32)
    clean2 = np.zeros((B, C, L), np.float32)
    for b in range(B):
        wl, cl, tp = int(wav_length[b]), int(clean_len[b]), np.float32(tempos[b])
        src = np.arange(L, dtype=np.float32) * tp            # f32, matches kernel
        i0u = np.floor(src)
        frac = (src - i0u).astype(np.float32)
        i0 = np.minimum(i0u.astype(np.int64), wl - 1)
        i1 = np.minimum(i0 + 1, wl - 1)
        stretched = (np.float32(1.0) - frac) * clean[b][:, i0] + frac * clean[b][:, i1]
        keep_c = min(cl, wl)
        keep_n = L if cl >= wl else cl
        clean2[b, :, :keep_c] = stretched[:, :keep_c]
        noise2[b, :, :keep_n] = noise[b, :, :keep_n]
    out = np.stack([noise2, clean2], axis=0)
    max_length = max(1, int(min(int(clean_len.max()), L)))
    return out[..., :max_length]


if __name__ == "__main__":
    S, B, C, L = 2, 2, 4, 128
    key = jax.random.PRNGKey(0)
    wav = jax.random.normal(key, (S, B, C, L), dtype=jnp.float32)
    wav_length = np.array([128, 100], dtype=np.int32)

    # Deterministic stand-in for np.random.uniform(0.9, 1.1) in tempo_effect.
    rng = np.random.default_rng(0)
    tempos = rng.uniform(0.9, 1.1, size=(B,)).astype(np.float32)

    out = jax.block_until_ready(tempo_augment(wav, wav_length, tempos))

    assert out.ndim == 4 and out.shape[0] == 2 and out.shape[1] == B \
        and out.shape[2] == C and out.shape[3] <= L
    assert bool(jnp.all(jnp.isfinite(out)))

    ref = _reference(np.asarray(wav), wav_length, tempos)
    assert out.shape == ref.shape, (out.shape, ref.shape)
    # Noise path is an exact f32 mask/copy; clean path is an f32 MXU matmul
    # of the band against the interp weights, so allow a small tolerance.
    np.testing.assert_allclose(np.asarray(out[0]), ref[0], rtol=0, atol=0)
    np.testing.assert_allclose(np.asarray(out[1]), ref[1], rtol=0, atol=5e-2)
    print("KERNEL_OK")
</pallas_src>

<mosaic_0001>
module attributes {stable_mosaic.version = 11 : i64} {
  func.func @_tempo_kernel(%arg0: i32, %arg1: i32, %arg2: memref<2xi32, #tpu.memory_space<smem>>, %arg3: memref<2xi32, #tpu.memory_space<smem>>, %arg4: memref<2xf32, #tpu.memory_space<smem>>, %arg5: memref<2x1xi32, #tpu.memory_space<smem>>, %arg6: memref<1x4x128xf32, #tpu.memory_space<vmem>>, %arg7: memref<1x4x128xf32, #tpu.memory_space<vmem>>, %arg8: memref<2x1x4x128xf32, #tpu.memory_space<vmem>>) attributes {dimension_semantics = [#tpu.dimension_semantics<parallel>, #tpu.dimension_semantics<parallel>], iteration_bounds = array<i64: 2, 1>, scalar_prefetch = 4 : i64, scratch_operands = 0 : i64, tpu.core_type = #tpu.core_type<tc>, window_params = [{transform_indices = @transform_0, window_bounds = array<i64: 1, 4, 128>}, {transform_indices = @transform_1, window_bounds = array<i64: 1, 4, 128>}, {transform_indices = @transform_2, window_bounds = array<i64: 2, 1, 4, 128>}]} {
    %0 = arith.index_cast %arg0 : i32 to index
    %1 = memref.load %arg2[%0] : memref<2xi32, #tpu.memory_space<smem>>
    %2 = arith.index_cast %arg0 : i32 to index
    %3 = memref.load %arg3[%2] : memref<2xi32, #tpu.memory_space<smem>>
    %4 = arith.index_cast %arg0 : i32 to index
    %5 = memref.load %arg4[%4] : memref<2xf32, #tpu.memory_space<smem>>
    %6 = arith.index_cast %arg0 : i32 to index
    %7 = arith.index_cast %arg1 : i32 to index
    %8 = memref.load %arg5[%6, %7] : memref<2x1xi32, #tpu.memory_space<smem>>
    %9 = tpu.assume_multiple %8, 128 : i32
    %10 = tpu.iota {dimensions = array<i32: 1>} : vector<1x128xi32>
    %c128_i32 = arith.constant 128 : i32
    %11 = arith.muli %arg1, %c128_i32 : i32
    %12 = vector.broadcast %11 : i32 to vector<1x128xi32>
    %13 = arith.addi %10, %12 : vector<1x128xi32>
    %14 = arith.sitofp %13 : vector<1x128xi32> to vector<1x128xf32>
    %15 = vector.broadcast %5 : f32 to vector<1x128xf32>
    %16 = arith.mulf %14, %15 : vector<1x128xf32>
    %17 = math.floor %16 : vector<1x128xf32>
    %18 = arith.fptosi %17 : vector<1x128xf32> to vector<1x128xi32>
    %19 = arith.sitofp %18 : vector<1x128xi32> to vector<1x128xf32>
    %20 = arith.subf %16, %19 : vector<1x128xf32>
    %c1_i32 = arith.constant 1 : i32
    %21 = arith.subi %1, %c1_i32 : i32
    %22 = vector.broadcast %21 : i32 to vector<1x128xi32>
    %23 = arith.minsi %18, %22 : vector<1x128xi32>
    %c1_i32_0 = arith.constant 1 : i32
    %24 = vector.broadcast %c1_i32_0 : i32 to vector<1x128xi32>
    %25 = arith.addi %23, %24 : vector<1x128xi32>
    %c1_i32_1 = arith.constant 1 : i32
    %26 = arith.subi %1, %c1_i32_1 : i32
    %27 = vector.broadcast %26 : i32 to vector<1x128xi32>
    %28 = arith.minsi %25, %27 : vector<1x128xi32>
    %29 = arith.cmpi eq, %28, %23 : vector<1x128xi32>
    %cst = arith.constant 1.000000e+00 : f32
    %30 = vector.broadcast %cst : f32 to vector<1x128xf32>
    %31 = arith.subf %30, %20 : vector<1x128xf32>
    %cst_2 = arith.constant 1.000000e+00 : f32
    %32 = vector.broadcast %cst_2 : f32 to vector<1x128xf32>
    %33 = arith.select %29, %32, %31 : vector<1x128xi1>, vector<1x128xf32>
    %34 = vector.broadcast %9 : i32 to vector<1x128xi32>
    %35 = arith.subi %23, %34 : vector<1x128xi32>
    %36 = vector.broadcast %9 : i32 to vector<1x128xi32>
    %37 = arith.subi %28, %36 : vector<1x128xi32>
    %38 = tpu.iota {dimensions = array<i32: 0>} : vector<128x128xi32>
    %39 = vector.broadcast %35 : vector<1x128xi32> to vector<128x128xi32>
    %40 = arith.cmpi eq, %38, %39 : vector<128x128xi32>
    %41 = vector.broadcast %37 : vector<1x128xi32> to vector<128x128xi32>
    %42 = arith.cmpi eq, %38, %41 : vector<128x128xi32>
    %cst_3 = arith.constant 0.000000e+00 : f32
    %43 = vector.shape_cast %20 : vector<1x128xf32> to vector<1x128xf32>
    %44 = vector.broadcast %43 : vector<1x128xf32> to vector<128x128xf32>
    %45 = vector.broadcast %cst_3 : f32 to vector<128x128xf32>
    %46 = arith.select %42, %44, %45 : vector<128x128xi1>, vector<128x128xf32>
    %47 = vector.shape_cast %33 : vector<1x128xf32> to vector<1x128xf32>
    %48 = vector.broadcast %47 : vector<1x128xf32> to vector<128x128xf32>
    %49 = arith.select %40, %48, %46 : vector<128x128xi1>, vector<128x128xf32>
    %c0 = arith.constant 0 : index
    %c0_4 = arith.constant 0 : index
    %50 = arith.index_cast %9 : i32 to index
    %51 = vector.load %arg7[%c0, %c0_4, %50] : memref<1x4x128xf32, #tpu.memory_space<vmem>>, vector<1x4x128xf32>
    %52 = vector.shape_cast %51 : vector<1x4x128xf32> to vector<4x128xf32>
    %cst_5 = arith.constant dense<0.000000e+00> : vector<4x128xf32>
    %53 = tpu.matmul %52, %49, %cst_5 {dimension_numbers = #tpu.dot_dimension_numbers<[1], [0], [0], [1], [0, 0, 1, 1], [], []>} : vector<4x128xf32>, vector<128x128xf32>, vector<4x128xf32> -> vector<4x128xf32>
    %54 = arith.minsi %3, %1 : i32
    %55 = arith.cmpi sge, %3, %1 : i32
    %c128_i32_6 = arith.constant 128 : i32
    %56 = arith.select %55, %c128_i32_6, %3 : i32
    %57 = vector.broadcast %54 : i32 to vector<1x128xi32>
    %58 = arith.cmpi slt, %13, %57 : vector<1x128xi32>
    %cst_7 = arith.constant 0.000000e+00 : f32
    %59 = vector.shape_cast %58 : vector<1x128xi1> to vector<1x128xi1>
    %60 = vector.broadcast %59 : vector<1x128xi1> to vector<4x128xi1>
    %61 = vector.broadcast %cst_7 : f32 to vector<4x128xf32>
    %62 = arith.select %60, %53, %61 : vector<4x128xi1>, vector<4x128xf32>
    %c1 = arith.constant 1 : index
    %c0_8 = arith.constant 0 : index
    %c0_9 = arith.constant 0 : index
    %c0_10 = arith.constant 0 : index
    %63 = vector.load %arg8[%c1, %c0_8, %c0_9, %c0_10] : memref<2x1x4x128xf32, #tpu.memory_space<vmem>>, vector<1x1x4x128xf32>
    %64 = vector.shape_cast %63 : vector<1x1x4x128xf32> to vector<4x128xf32>
    %65 = vector.shape_cast %62 : vector<4x128xf32> to vector<1x1x4x128xf32>
    tpu.vector_store %arg8[%c1, %c0_8, %c0_9, %c0_10], %65 {strides = array<i32>} : memref<2x1x4x128xf32, #tpu.memory_space<vmem>>, vector<1x1x4x128xf32>,
    %66 = vector.broadcast %56 : i32 to vector<1x128xi32>
    %67 = arith.cmpi slt, %13, %66 : vector<1x128xi32>
    %c0_11 = arith.constant 0 : index
    %c0_12 = arith.constant 0 : index
    %c0_13 = arith.constant 0 : index
    %68 = vector.load %arg6[%c0_11, %c0_12, %c0_13] : memref<1x4x128xf32, #tpu.memory_space<vmem>>, vector<1x4x128xf32>
    %69 = vector.shape_cast %68 : vector<1x4x128xf32> to vector<4x128xf32>
    %cst_14 = arith.constant 0.000000e+00 : f32
    %70 = vector.shape_cast %67 : vector<1x128xi1> to vector<1x128xi1>
    %71 = vector.broadcast %70 : vector<1x128xi1> to vector<4x128xi1>
    %72 = vector.broadcast %cst_14 : f32 to vector<4x128xf32>
    %73 = arith.select %71, %69, %72 : vector<4x128xi1>, vector<4x128xf32>
    %c0_15 = arith.constant 0 : index
    %c0_16 = arith.constant 0 : index
    %c0_17 = arith.constant 0 : index
    %c0_18 = arith.constant 0 : index
    %74 = vector.load %arg8[%c0_15, %c0_16, %c0_17, %c0_18] : memref<2x1x4x128xf32, #tpu.memory_space<vmem>>, vector<1x1x4x128xf32>
    %75 = vector.shape_cast %74 : vector<1x1x4x128xf32> to vector<4x128xf32>
    %76 = vector.shape_cast %73 : vector<4x128xf32> to vector<1x1x4x128xf32>
    tpu.vector_store %arg8[%c0_15, %c0_16, %c0_17, %c0_18], %76 {strides = array<i32>} : memref<2x1x4x128xf32, #tpu.memory_space<vmem>>, vector<1x1x4x128xf32>,
    return
  }
  func.func @transform_0(%arg0: i32, %arg1: i32, %arg2: memref<2xi32, #tpu.memory_space<smem>>, %arg3: memref<2xi32, #tpu.memory_space<smem>>, %arg4: memref<2xf32, #tpu.memory_space<smem>>, %arg5: memref<2x1xi32, #tpu.memory_space<smem>>) -> (i32, i32, i32) {
    %c0_i32 = arith.constant 0 : i32
    %c0_i32_0 = arith.constant 0 : i32
    return %arg0, %c0_i32, %arg1 : i32, i32, i32
  }
  func.func @transform_1(%arg0: i32, %arg1: i32, %arg2: memref<2xi32, #tpu.memory_space<smem>>, %arg3: memref<2xi32, #tpu.memory_space<smem>>, %arg4: memref<2xf32, #tpu.memory_space<smem>>, %arg5: memref<2x1xi32, #tpu.memory_space<smem>>) -> (i32, i32, i32) {
    %c0_i32 = arith.constant 0 : i32
    %c0_i32_0 = arith.constant 0 : i32
    %c0_i32_1 = arith.constant 0 : i32
    return %arg0, %c0_i32, %c0_i32_0 : i32, i32, i32
  }
  func.func @transform_2(%arg0: i32, %arg1: i32, %arg2: memref<2xi32, #tpu.memory_space<smem>>, %arg3: memref<2xi32, #tpu.memory_space<smem>>, %arg4: memref<2xf32, #tpu.memory_space<smem>>, %arg5: memref<2x1xi32, #tpu.memory_space<smem>>) -> (i32, i32, i32, i32) {
    %c0_i32 = arith.constant 0 : i32
    %c0_i32_0 = arith.constant 0 : i32
    %c0_i32_1 = arith.constant 0 : i32
    return %c0_i32, %arg0, %c0_i32_0, %arg1 : i32, i32, i32, i32
  }
}

</mosaic_0001>

<bundles_post_ra>
// kernel: tpu_custom_call.1
= control target key start
LH: loop header
LB: loop body
LE: loop exit
PB: predicated region body
PF: predicated region fallthrough
CT: control target
= control target key end

     0   :  { %s1183_s0 = inlined_call_operand.vmem [shape: s32[2], index: 0, kind: input, shape index: {}]   ;;  %s1184_s4 = inlined_call_operand.vmem [shape: f32[2,4,128], index: 4, kind: input, shape index: {}]   ;;  %s1185_s5 = inlined_call_operand.hbm [shape: f32[2,4,128], index: 5, kind: input, shape index: {}]   ;;  %s1186_s6 = inlined_call_operand.hbm [shape: f32[2,2,4,128], index: 6, kind: output, shape index: {}]   ;;  %s1187_s1 = inlined_call_operand.vmem [shape: s32[2], index: 1, kind: input, shape index: {}]   ;;  %s1188_s3 = inlined_call_operand.vmem [shape: s32[2,1], index: 3, kind: input, shape index: {}]   ;;  %s1189_s2 = inlined_call_operand.hbm [shape: f32[2], index: 2, kind: input, shape index: {}]  }
   0x1   :  { %s11_s23 = sshll.u32 %s1183_s0, 4  ;;  %s15_s26 = sshll.u32 %s1187_s1, 4  ;;  %s12_s23 = int_to_ptr.vmem [resolvable:$true] %s11_s23  ;;  %s16_s26 = int_to_ptr.vmem [resolvable:$true] %s15_s26 }
   0x2   :  { %s684_s27 = scalar_lea.vmem %s12_s23, 16  ;;  %p689_p1 = scmp.lt.s32.totalorder %s12_s23, %s12_s23 }
   0x3   :  { %p685_p0 = scmp.ne.s32.totalorder %s12_s23, %s684_s27  ;;  %p690_p2 = scmp.lt.s32.totalorder %s684_s27, %s684_s27 }
   0x5   :  { %p691_p3 = por %p690_p2, %p689_p1 }
   0x7   :  { %p692_p4 = pnand %p691_p3, %p685_p0 }
   0x9   :  { %695 = shalt.err (!%p692_p4)  }
   0xa   :  { %s840_s28 = smov [#allocation3]   ;;  %s696_s29 = scalar_lea.vmem %s16_s26, 16 }
   0xb   :  { %14 = dma.vmem_to_smem %s12_s23, 16, %s840_s28, [#allocation2] }
   0xc   :  { %p697_p5 = scmp.ne.s32.totalorder %s16_s26, %s696_s29  ;;  %p701_p6 = scmp.lt.s32.totalorder %s16_s26, %s16_s26 }
   0xd   :  { %p702_p7 = scmp.lt.s32.totalorder %s696_s29, %s696_s29 }
   0xf   :  { %p703_p8 = por %p702_p7, %p701_p6 }
  0x11   :  { %p704_p9 = pnand %p703_p8, %p697_p5 }
  0x13   :  { %707 = shalt.err (!%p704_p9)  }
  0x14   :  { %s841_s0 = smov [#allocation4]   ;;  %s21_s7 = sshll.u32 %s1188_s3, 4  ;;  %s22_s7 = int_to_ptr.vmem [resolvable:$true] %s21_s7 }
  0x15   :  { %18 = dma.vmem_to_smem %s16_s26, 16, %s841_s0, [#allocation2] }
  0x16   :  { %s842_s8 = smov [#allocation5]   ;;  %s716_s11 = scalar_lea.vmem %s22_s7, 32 }
  0x17   :  { %20 = dma.hbm_to_smem %s1189_s2, 16, %s842_s8, [#allocation2] }
  0x18   :  { %p717_p10 = scmp.ne.s32.totalorder %s22_s7, %s716_s11  ;;  %p721_p11 = scmp.lt.s32.totalorder %s22_s7, %s22_s7 }
  0x19   :  { %p722_p12 = scmp.lt.s32.totalorder %s716_s11, %s716_s11 }
  0x1b   :  { %p723_p13 = por %p722_p12, %p721_p11 }
  0x1d   :  { %p724_p0 = pnand %p723_p13, %p717_p10 }
  0x1f   :  { %727 = shalt.err (!%p724_p0)  }
  0x20   :  { %s843_s12 = smov [#allocation6]  }
  0x21   :  { %24 = dma.vmem_to_smem %s22_s7, 32, %s843_s12, [#allocation2] }
  0x22   :  { %806 = dma.done.wait [#allocation2], 80 }
  0x23   :  { %807 = vsyncadd [#allocation2], 4294967216 }
  0x24   :  { %26 = sfence }
  0x25   :  { %27 = vsyncpa [#allocation8], 0 }
  0x26   :  { %29 = vsyncpa [#allocation8 + $0x1], 0 }
  0x27   :  { %30 = vsyncpa [#allocation9], 0 }
  0x28   :  { %32 = vsyncpa [#allocation9 + $0x1], 0  ;;  %s898_s3 = smov 0   ;;  %s900_s2 = smov 0  }
  0x29   :  { %s902_s13 = smov 0   ;;  %s904_s14 = smov 0  }
  0x2a   :  { %s906_s15 = smov 0   ;;  %s908_s16 = smov 0  }
  0x2b LB: > { %s542_s17 = sadd.s32 4294967295, %s838_s16   ;;  %s543_s18 = sadd.s32 4294967294, %s838_s16   ;;  %s838_s16 = sphi %s908_s16, %s38_s16   ;;  %s834_s15 = sphi %s906_s15, %s1201_s15   ;;  %s830_s14 = sphi %s904_s14, %s1200_s14   ;;  %s826_s13 = sphi %s902_s13, %s1199_s13   ;;  %s822_s2 = sphi %s900_s2, %s1198_s2   ;;  %s818_s3 = sphi %s898_s3, %s1197_s3  }
  0x2c   : > { %s50_s19 = sadd.s32 1, %s834_s15  ;;  %s85_s20 = sadd.s32 1, %s826_s13 }
  0x2d   : > { %p52_p1 = scmp.ge.s32.totalorder %s50_s19, 2  ;;  %p92_p2 = scmp.ne.s32.totalorder %s826_s13, %s822_s2 }
  0x2e   : > { %p93_p3 = scmp.eq.s32.totalorder %s838_s16, 0  ;;  %p98_p4 = scmp.ne.s32.totalorder %s822_s2, %s818_s3 }
  0x2f   : > { %s1203_s19 = smov (%p52_p1, %s50_s19), 0  ;;  %p99_p6 = scmp.eq.s32.totalorder %s542_s17, 0 }
  0x30   : > { %p939_p5 = por %p93_p3, %p92_p2  ;;  %s82_s22 = ssub.s32 %s834_s15, %s1203_s19 }
  0x31   : > { %p124_p7 = scmp.eq.s32.totalorder %s542_s17, 1  ;;  %p83_p8 = scmp.eq.s32.totalorder %s82_s22, 0 }
  0x32   : > { %p945_p9 = por %p99_p6, %p98_p4  ;;  %p130_p11 = scmp.eq.s32.totalorder %s543_s18, 1 }
  0x33   : > { %p949_p10 = por %p124_p7, %p92_p2  ;;  %p625_p0 = scmp.lt.s32.totalorder %s838_s16, 2 }
  0x34   : > { %s954_s25 = scalar_select %p83_p8, %s826_s13, %s85_s20  }
  0x35   : > { %p956_p12 = por %p130_p11, %p98_p4  ;;  %s160_s27 = sand.u32 1, %s826_s13  }
  0x36   : > { %s546_s28 = sshll.u32 %s160_s27, 2  ;;  %s547_s29 = sshll.u32 %s834_s15, 6 }
  0x37   : > { %s1193_s26 = scalar_select %p956_p12, 1, 0 }
  0x38   : > { %s169_s30 = scalar_lea.hbm %s1185_s5, %s547_s29  ;;  %s164_s7 = scalar_lea.vmem [#allocation7], %s546_s28 }
  0x39   : > { %s171_s8 = sshll.u32 %s164_s7, 4  ;;  %p969_p1 = pnand %p625_p0, %p939_p5  ;;  %s172_s8 = int_to_ptr.vmem [resolvable:$true] %s171_s8 }
  0x3a   : > { %p548_p2 = scmp.ge.s32.totalorder %s838_s16, 1  ;;  %p176_p3 = scmp.lt.s32.totalorder %s838_s16, 3 }
  0x3b   : > { %s161_s10 = scalar_lea.sflag [#allocation8], %s160_s27  ;;  %p730_p4 = pneg %p969_p1 }
  0x3c   : > { %s741_s11 = scalar_lea.vmem %s172_s8, 64  ;;  %s844_s12 = smov [#allocation7]  }
  0x3d   : > { %p742_p6 = scmp.ne.s32.totalorder %s172_s8, %s741_s11  ;;  %s746_s17 = sshll.u32 %s844_s12, 4  ;;  %s747_s17 = int_to_ptr.vmem [resolvable:$false] %s746_s17 }
  0x3e   : > { %s748_s18 = scalar_lea.vmem %s747_s17, 128  ;;  %p749_p11 = scmp.lt.s32.totalorder %s172_s8, %s747_s17 }
  0x3f   : > { %p744_p7 = pnand %p742_p6, %p730_p4  ;;  %p750_p13 = scmp.lt.s32.totalorder %s748_s18, %s741_s11 }
  0x41   : > { %p745_p8 = pneg %p744_p7  ;;  %p751_p5 = por %p750_p13, %p749_p11 }
  0x43   : > { %p752_p0 = pnand %p751_p5, %p745_p8 }
  0x45   : > { %755 = shalt.err (!%p752_p0)
}
  0x46   : > { %620 = dma.hbm_to_vmem [thread:$0]  (!%p969_p1), %s169_s30, 64, %s172_s8, %s161_s10  }
  0x47   : > { %p177_p12 = pnand %p548_p2, %p176_p3 }
  0x48   : > { %s984_s20 = sand.u32 (!%p177_p12), 1, %s822_s2  }
  0x49   : > { %180 = sbr.rel (%p177_p12) target bundleno = 345 (0x159), region = 28  ;;  %s549_s21 = sshll.u32 (!%p177_p12), %s984_s20, 2 }
  0x4a   : > { %s183_s22 = scalar_lea.sflag (!%p177_p12), [#allocation8], %s984_s20  ;;  %s988_s27 = scalar_lea.vmem (!%p177_p12), [#allocation7], %s549_s21 }
  0x4e   : > { %809 = dma.done.wait (%p945_p9), %s183_s22, 64  }
  0x4f   : > { %811 = vsyncadd (%p945_p9), %s183_s22, 4294967232  ;;  %v232_v0 = vlaneseq  ;;  %v845_v1 = vmov 0.0   ;;  %vm846_vm0 = vmmov 0   ;;  %s223_s28 = sld [smem:[#allocation5 + %s830_s14]]  ;;  %s552_s23 = sshll.u32 %s830_s14, 7 }
  0x50   : > { %576 = vmatprep.subr.mxu0 %v845_v1  ;;  %608 = vmatprep.mubr.msk.f32.mxu0 %vm846_vm0, %v845_v1  ;;  %s1000_s29 = sld [smem:[#allocation3 + %s830_s14]]  ;;  %p214_p9 = scmp.lt.s32.totalorder %s830_s14, 1 }
  0x51   : > { %v996_v2 = vand.u32 127, %v232_v0  ;;  %s1004_s0 = sld [smem:[#allocation6 + %s552_s23]]  ;;  %v1007_v10 = vshrl.u32 %v232_v0, 7  ;;  %s550_s11 = sshll.u32 %s984_s20, 3 }
  0x52   : > { %s222_s8 = sld [smem:[#allocation4 + %s830_s14]]  ;;  %s213_s22 = scalar_lea.vmem [#allocation10], %s550_s11 }
  0x53   : > { %v237_v3 = vcvt.s32.f32 %v996_v2  ;;  %v273_v17 = vadd.s32 120, %v1007_v10  ;;  %v272_v18 = vadd.s32 112, %v1007_v10  ;;  %v271_v20 = vadd.s32 104, %v1007_v10  ;;  %s215_s9 = scalar_select %p214_p9, %s830_s14, 1 }
  0x54   : > { %v270_v21 = vadd.s32 96, %v1007_v10  ;;  %v269_v24 = vadd.s32 88, %v1007_v10  ;;  %v268_v26 = vadd.s32 80, %v1007_v10  ;;  %v267_v32 = vadd.s32 72, %v1007_v10 }
  0x55   : > { %v238_v4 = vstv %s223_s28  ;;  %v266_v35 = vadd.s32 64, %v1007_v10  ;;  %v265_v38 = vadd.s32 56, %v1007_v10  ;;  %v264_v41 = vadd.s32 48, %v1007_v10  ;;  %s551_s10 = sshll.u32 %s215_s9, 2  ;;  %s556_s28 = sshll.u32 %s830_s14, 6 }
  0x56   : > { %v239_v5 = vmul.f32 %v238_v4, %v237_v3  ;;  %s553_s1 = sadd.s32 4294967295, %s1000_s29  ;;  %v263_v44 = vadd.s32 40, %v1007_v10  ;;  %v262_v47 = vadd.s32 32, %v1007_v10  ;;  %v261_v50 = vadd.s32 24, %v1007_v10  ;;  %s220_s18 = scalar_lea.vmem %s1184_s4, %s551_s10 }
  0x57   : > { %v245_v8 = vstv %s553_s1  ;;  %v254_v12 = vstv %s1004_s0  ;;  %v260_v53 = vadd.s32 16, %v1007_v10  ;;  %v259_v56 = vadd.s32 8, %v1007_v10  ;;  %s338_s30 = sshra.s32 %s1004_s0, 7  ;;  %s1135_s1 = scalar_lea.hbm %s1186_s6, %s556_s28 }
  0x58   : > { %v240_v6 = vfloor.f32 %v239_v5  ;;  %s340_s7 = scalar_lea.vmem %s988_s27, %s338_s30 [#allocation7]  ;;  %p414_p12 = scmp.ge.s32.totalorder %s222_s8, %s1000_s29 }
  0x59   : > { %p412_p13 = scmp.lt.s32.totalorder %s222_s8, %s1000_s29  ;;  %s444_s27 = sshll.u32 %s213_s22, 4  ;;  %s1130_s27 = int_to_ptr.vmem [resolvable:$true] %s444_s27 }
  0x5a   : > { %v611_v7 = vtrunc.f32 %v240_v6  ;;  %v341_v6 = vld [vmem:[%s340_s7] sm:$0xf]  ;;  %s415_s21 = scalar_select %p414_p12, 128, %s222_s8 }
  0x5b   : > { %s1205_s8 = smov (!%p412_p13, %s222_s8), %s1000_s29  ;;  %s431_s29 = scalar_lea.sflag [#allocation9], %s984_s20 }
  0x5c   : > { %v612_v9 = vcvt.f32.s32 %v611_v7  ;;  %v423_v7 = vstv %s415_s21  ;;  %s756_s30 = scalar_lea.vmem %s1130_s27, 128  ;;  %s847_s14 = smov [#allocation10]  }
  0x5d   : > { %p757_p1 = scmp.ne.s32.totalorder %s1130_s27, %s756_s30  ;;  %s760_s7 = sshll.u32 %s847_s14, 4  ;;  %s761_s7 = int_to_ptr.vmem [resolvable:$false] %s760_s7 }
  0x5e   : > { %v242_v11 = vcvt.s32.f32 %v612_v9  ;;  %vm246_vm1 = vcmp.lt.s32.totalorder %v612_v9, %v245_v8  ;;  %p763_p4 = scmp.lt.s32.totalorder %s1130_s27, %s761_s7 }
  0x5f   : > { %v247_v13 = vsel %vm246_vm1, %v612_v9, %v245_v8  ;;  %v416_v9 = vstv %s1205_s8  ;;  %p758_p2 = pnand %p757_p1, %p949_p10  ;;  %s762_s8 = scalar_lea.vmem %s761_s7, 256 }
  0x60   : > { %v1010_v14 = vsub.f32 %v239_v5, %v242_v11  ;;  %v248_v15 = vadd.s32 1, %v247_v13  ;;  %v1012_v16 = vsub.s32 %v247_v13, %v254_v12  ;;  %p764_p6 = scmp.lt.s32.totalorder %s762_s8, %s756_s30 }
  0x61   : > { %p759_p3 = pneg %p758_p2 }
  0x62   : > { %vm249_vm2 = vcmp.lt.s32.totalorder %v248_v15, %v245_v8  ;;  %v252_v19 = vsub.f32 1.0, %v1010_v14  ;;  %vm289_vm4 = vcmp.eq.s32.totalorder %v273_v17, %v1012_v16  ;;  %vm288_vm5 = vcmp.eq.s32.totalorder %v272_v18, %v1012_v16  ;;  %p765_p7 = por %p764_p6, %p763_p4 }
  0x63   : > { %v250_v22 = vsel %vm249_vm2, %v248_v15, %v245_v8  ;;  %vm287_vm10 = vcmp.eq.s32.totalorder %v271_v20, %v1012_v16  ;;  %vm286_vm11 = vcmp.eq.s32.totalorder %v270_v21, %v1012_v16  ;;  %vm285_vm14 = vcmp.eq.s32.totalorder %v269_v24, %v1012_v16  ;;  %v425_v8 = vld [vmem:[%s220_s18] sm:$0xf] }
  0x64   : > { %vm251_vm3 = vcmp.eq.s32.totalorder %v250_v22, %v247_v13  ;;  %v1019_v23 = vsub.s32 %v250_v22, %v254_v12  ;;  %vm284_vm0 = vcmp.eq.s32.totalorder %v268_v26, %v1012_v16  ;;  %vm283_vm2 = vcmp.eq.s32.totalorder %v267_v32, %v1012_v16  ;;  %p766_p8 = pnand %p765_p7, %p759_p3 }
  0x65   : > { %v1022_v25 = vsel %vm251_vm3, 1.0, %v252_v19 }
  0x66   : > { %vm305_vm6 = vcmp.eq.s32.totalorder %v273_v17, %v1019_v23  ;;  %vm304_vm7 = vcmp.eq.s32.totalorder %v272_v18, %v1019_v23  ;;  %vm303_vm8 = vcmp.eq.s32.totalorder %v271_v20, %v1019_v23  ;;  %vm302_vm9 = vcmp.eq.s32.totalorder %v270_v21, %v1019_v23 }
  0x67   : > { %v321_v27 = vsel %vm305_vm6, %v1010_v14, 0.0  ;;  %v320_v28 = vsel %vm304_vm7, %v1010_v14, 0.0  ;;  %v319_v29 = vsel %vm303_vm8, %v1010_v14, 0.0  ;;  %v318_v33 = vsel %vm302_vm9, %v1010_v14, 0.0 }
  0x68   : > { %v337_v30 = vsel %vm289_vm4, %v1022_v25, %v321_v27  ;;  %v336_v31 = vsel %vm288_vm5, %v1022_v25, %v320_v28  ;;  %vm301_vm12 = vcmp.eq.s32.totalorder %v269_v24, %v1019_v23  ;;  %v335_v34 = vsel %vm287_vm10, %v1022_v25, %v319_v29 }
  0x69   : > { %577 = vmatpush3.msra.mxu0 %v337_v30  ;;  %vm300_vm13 = vcmp.eq.s32.totalorder %v268_v26, %v1019_v23  ;;  %v317_v36 = vsel %vm301_vm12, %v1010_v14, 0.0  ;;  %v334_v37 = vsel %vm286_vm11, %v1022_v25, %v318_v33  ;;  %vm299_vm15 = vcmp.eq.s32.totalorder %v267_v32, %v1019_v23 }
  0x6a   : > { %578 = vmatprep.subr.mxu0 %v845_v1  ;;  %v316_v39 = vsel %vm300_vm13, %v1010_v14, 0.0  ;;  %v333_v40 = vsel %vm285_vm14, %v1022_v25, %v317_v36  ;;  %vm298_vm1 = vcmp.eq.s32.totalorder %v266_v35, %v1019_v23  ;;  %v315_v42 = vsel %vm299_vm15, %v1010_v14, 0.0 }
  0x6b   : > { %579 = vmatpush3.msra.mxu0 %v336_v31  ;;  %v332_v43 = vsel %vm284_vm0, %v1022_v25, %v316_v39  ;;  %vm297_vm3 = vcmp.eq.s32.totalorder %v265_v38, %v1019_v23  ;;  %vm282_vm4 = vcmp.eq.s32.totalorder %v266_v35, %v1012_v16  ;;  %v314_v45 = vsel %vm298_vm1, %v1010_v14, 0.0 }
  0x6c   : > { %580 = vmatprep.subr.mxu0 %v845_v1  ;;  %v331_v46 = vsel %vm283_vm2, %v1022_v25, %v315_v42  ;;  %vm296_vm5 = vcmp.eq.s32.totalorder %v264_v41, %v1019_v23  ;;  %vm281_vm6 = vcmp.eq.s32.totalorder %v265_v38, %v1012_v16  ;;  %v313_v48 = vsel %vm297_vm3, %v1010_v14, 0.0 }
  0x6d   : > { %581 = vmatpush3.msra.mxu0 %v335_v34  ;;  %v330_v49 = vsel %vm282_vm4, %v1022_v25, %v314_v45  ;;  %vm295_vm7 = vcmp.eq.s32.totalorder %v263_v44, %v1019_v23  ;;  %vm280_vm8 = vcmp.eq.s32.totalorder %v264_v41, %v1012_v16  ;;  %v312_v51 = vsel %vm296_vm5, %v1010_v14, 0.0 }
  0x6e   : > { %582 = vmatprep.subr.mxu0 %v845_v1  ;;  %v329_v52 = vsel %vm281_vm6, %v1022_v25, %v313_v48  ;;  %vm294_vm9 = vcmp.eq.s32.totalorder %v262_v47, %v1019_v23  ;;  %vm279_vm10 = vcmp.eq.s32.totalorder %v263_v44, %v1012_v16  ;;  %v311_v54 = vsel %vm295_vm7, %v1010_v14, 0.0 }
  0x6f   : > { %583 = vmatpush3.msra.mxu0 %v334_v37  ;;  %v328_v55 = vsel %vm280_vm8, %v1022_v25, %v312_v51  ;;  %vm293_vm11 = vcmp.eq.s32.totalorder %v261_v50, %v1019_v23  ;;  %vm278_vm12 = vcmp.eq.s32.totalorder %v262_v47, %v1012_v16  ;;  %v310_v57 = vsel %vm294_vm9, %v1010_v14, 0.0 }
  0x70   : > { %584 = vmatprep.subr.mxu0 %v845_v1  ;;  %v327_v58 = vsel %vm279_vm10, %v1022_v25, %v311_v54  ;;  %vm292_vm13 = vcmp.eq.s32.totalorder %v260_v53, %v1019_v23  ;;  %vm277_vm14 = vcmp.eq.s32.totalorder %v261_v50, %v1012_v16  ;;  %v309_v59 = vsel %vm293_vm11, %v1010_v14, 0.0 }
  0x71   : > { %585 = vmatpush3.msra.mxu0 %v333_v40  ;;  %v326_v60 = vsel %vm278_vm12, %v1022_v25, %v310_v57  ;;  %vm291_vm15 = vcmp.eq.s32.totalorder %v259_v56, %v1019_v23  ;;  %vm276_vm0 = vcmp.eq.s32.totalorder %v260_v53, %v1012_v16  ;;  %v308_v61 = vsel %vm292_vm13, %v1010_v14, 0.0 }
  0x72   : > { %586 = vmatprep.subr.mxu0 %v845_v1  ;;  %v325_v62 = vsel %vm277_vm14, %v1022_v25, %v309_v59  ;;  %vm290_vm1 = vcmp.eq.s32.totalorder %v1007_v10, %v1019_v23  ;;  %vm275_vm2 = vcmp.eq.s32.totalorder %v259_v56, %v1012_v16  ;;  %v307_v63 = vsel %vm291_vm15, %v1010_v14, 0.0 }
  0x73   : > { %587 = vmatpush3.msra.mxu0 %v332_v43  ;;  %v324_v0 = vsel %vm276_vm0, %v1022_v25, %v308_v61  ;;  %vm274_vm3 = vcmp.eq.s32.totalorder %v1007_v10, %v1012_v16  ;;  %v306_v3 = vsel %vm290_vm1, %v1010_v14, 0.0  ;;  %v323_v4 = vsel %vm275_vm2, %v1022_v25, %v307_v63 }
  0x74   : > { %588 = vmatprep.subr.mxu0 %v845_v1  ;;  %v322_v5 = vsel %vm274_vm3, %v1022_v25, %v306_v3  ;;  %vm424_vm4 = vcmp.lt.s32.totalorder %v996_v2, %v423_v7  ;;  %vm417_vm5 = vcmp.lt.s32.totalorder %v996_v2, %v416_v9 }
  0x75   : > { %589 = vmatpush3.msra.mxu0 %v331_v46 }
  0x76   : > { %590 = vmatprep.subr.mxu0 %v845_v1 }
  0x77   : > { %591 = vmatpush3.msra.mxu0 %v330_v49 }
  0x78   : > { %592 = vmatprep.subr.mxu0 %v845_v1 }
  0x79   : > { %593 = vmatpush3.msra.mxu0 %v329_v52 }
  0x7a   : > { %594 = vmatprep.subr.mxu0 %v845_v1 }
  0x7b   : > { %595 = vmatpush3.msra.mxu0 %v328_v55 }
  0x7c   : > { %596 = vmatprep.subr.mxu0 %v845_v1 }
  0x7d   : > { %597 = vmatpush3.msra.mxu0 %v327_v58 }
  0x7e   : > { %598 = vmatprep.subr.mxu0 %v845_v1 }
  0x7f   : > { %599 = vmatpush3.msra.mxu0 %v326_v60 }
  0x80   : > { %600 = vmatprep.subr.mxu0 %v845_v1 }
  0x81   : > { %601 = vmatpush3.msra.mxu0 %v325_v62 }
  0x82   : > { %602 = vmatprep.subr.mxu0 %v845_v1 }
  0x83   : > { %603 = vmatpush3.msra.mxu0 %v324_v0 }
  0x84   : > { %604 = vmatprep.subr.mxu0 %v845_v1 }
  0x85   : > { %605 = vmatpush3.msra.mxu0 %v323_v4 }
  0x86   : > { %606 = vmatprep.subr.mxu0 %v845_v1  ;;  %v428_v1 = vsel %vm424_vm4, %v425_v8, 0.0 }
  0x87   : > { %607 = vmatpush3.msra.mxu0 %v322_v5  ;;  %429 = vst [vmem:[%s213_s22] sm:$0xf] %v428_v1 }
  0x88   : > { %609 = vmatmul.mubr.f32.vlgmr.msra.gmra.mxu0 %v341_v6 }
 0x148   : > { %v408_v10 = vpop.f32.mrf.mxu0 }
 0x149   : > { %v420_v11 = vsel %vm417_vm5, %v408_v10, 0.0 }
 0x14a   : > { %554 = vst [vmem:[%s213_s22 + $0x4] sm:$0xf] %v420_v11  ;;  %v610_v12 = vpop.f32.mrf.mxu0 }
 0x14b   : > { %769 = shalt.err (!%p766_p8)
}
 0x14c   : > { %s770_s9 = scalar_lea.hbm %s1135_s1, 128  ;;  %s774_s12 = scalar_lea.hbm %s1186_s6, 256 }
 0x14d   : > { %p771_p11 = scmp.ne.s32.totalorder %s1135_s1, %s770_s9  ;;  %p775_p9 = scmp.lt.s32.totalorder %s1135_s1, %s1186_s6 }
 0x14e   : > { %p776_p12 = scmp.lt.s32.totalorder %s774_s12, %s770_s9 }
 0x14f   : > { %p772_p5 = pnand %p771_p11, %p949_p10 }
 0x150   : > { %p777_p13 = por %p776_p12, %p775_p9 }
 0x151   : > { %p773_p0 = pneg %p772_p5 }
 0x153   : > { %p778_p1 = pnand %p777_p13, %p773_p0 }
 0x155   : > { %781 = shalt.err (!%p778_p1)
}
 0x156   : > { %s848_s21 = smov 64   ;;  %s849_s22 = smov 128  }
 0x157   : > { %s850_s28 = smov 4  }
 0x158   : > { %615 = dma.vmem_to_hbm [thread:$0]  (%p949_p10), %s1130_s27, 128, %s1135_s1, %s431_s29, %s848_s21, %s849_s22, %s850_s28  }
 0x159 PF: > { %s459_s23 = sand.u32 1, %s818_s3   ;;  %p1195_p2 = scmp.ne.s32.totalorder %s1193_s26, 0 }
 0x15a   : > { %p1196_p3 = scmp.ge.s32.totalorder %s838_s16, 2  ;;  %s460_s0 = scalar_lea.sflag [#allocation9], %s459_s23 }
 0x15c   : > { %p622_p4 = pnand %p1196_p3, %p1195_p2 }
 0x15e   : > { %p623_p6 = pneg %p622_p4 }
 0x160   : > { %813 = dma.done.wait (%p623_p6), %s460_s0, 128  }
 0x161   : > { %815 = vsyncadd (%p623_p6), %s460_s0, 4294967168  ;;  %s38_s16 = sadd.s32 1, %s838_s16   ;;  %s1197_s3 = smov %s822_s2 }
 0x162   : > { %p35_p7 = scmp.ge.s32.totalorder %s38_s16, 4   ;;  %s1198_s2 = smov %s826_s13 }
 0x163   : > { %s1199_s13 = smov %s954_s25  ;;  %s1200_s14 = smov %s834_s15 }
 0x164   : > { %s1201_s15 = smov %s1203_s19  ;;  %37 = sbr.rel (!%p35_p7) target bundleno = 43 (0x2b), region = 78 }
 0x169   :  { %465 = vsyncpa [#allocation8], 1 }
 0x16a   :  { %467 = vsyncpa [#allocation8 + $0x1], 1 }
 0x16b   :  { %468 = vsyncpa [#allocation9], 1 }
 0x16c   :  { %470 = vsyncpa [#allocation9 + $0x1], 1 }

</bundles_post_ra>
